<compile_context>
chip_gen: v7x
topology: tpu7x:2x2x1
jax: 0.10.0
libtpu: 0.0.40
codegen_flags: <defaults>
</compile_context>

<pallas_src>
import functools

import jax
import jax.numpy as jnp
from jax import lax
from jax.experimental import pallas as pl
from jax.experimental.pallas import tpu as pltpu

# ----------------------------- config (small, synthetic) -----------------------------
B, S, H = 2, 8, 32
NUM_HEADS = 4
HEAD_DIM = H // NUM_HEADS
INTERMEDIATE = 4 * H          # 128 — a multiple of 128, so the [w1 | wo] slab keeps wo lane-aligned
LN_EPS = 1e-5


def _layer_norm(x, gamma, beta):
    mu = jnp.mean(x, axis=-1, keepdims=True)
    var = jnp.mean((x - mu) ** 2, axis=-1, keepdims=True)
    return (x - mu) * jax.lax.rsqrt(var + LN_EPS) * gamma + beta


# ----------------------------------- Pallas kernel -----------------------------------
def encoder_layer_kernel(x_ref, slab_ref, wqkv_ref, wmid_ref, w2_ref, out_ref,
                         *, num_heads, group):
    m, hdim = x_ref.shape                    # m = batch * seq (batch folded into rows)
    head_dim = hdim // num_heads
    inter = w2_ref.shape[0]

    x = x_ref[...]                           # (M, H) f32 — kept f32 for the residual paths
    x_bf = x.astype(jnp.bfloat16)            # MXU operand

    # -------- packed scalar slab (single DMA) --------
    mask = slab_ref[0:m, 0:m]                            # (M, M) block-diag additive mask
    cos = slab_ref[0:m, group:group + hdim]              # (M, H)
    sin = slab_ref[0:m, 2 * group:2 * group + hdim]      # (M, H)
    b_qkv = slab_ref[m:m + 1, :]                          # (1, 5*group), zero in padding lanes
    b1 = slab_ref[m + 1:m + 2, 0:inter]
    bo = slab_ref[m + 2:m + 3, 0:hdim]
    b2 = slab_ref[m + 3:m + 4, 0:hdim]
    ln1_g = slab_ref[m + 4:m + 5, 0:hdim]
    ln1_b = slab_ref[m + 5:m + 6, 0:hdim]
    ln2_g = slab_ref[m + 6:m + 7, 0:hdim]
    ln2_b = slab_ref[m + 7:m + 8, 0:hdim]

    # ---- fused QKV (+ pre-rotated, pre-scaled q/k columns): one MXU push, bf16 in / f32 acc ----
    qkv = jnp.dot(x_bf, wqkv_ref[...], preferred_element_type=jnp.float32) + b_qkv
    # RoPE (rotate-half) as q*cos + (x @ (Wq R) + bq R)*sin — zero lane-crossing ops; the softmax
    # 1/sqrt(head_dim) scale is already folded into the q / q_rot columns by the wrapper.
    q = qkv[:, 0:hdim] * cos + qkv[:, 3 * group:3 * group + hdim] * sin
    k = qkv[:, group:group + hdim] * cos + qkv[:, 4 * group:4 * group + hdim] * sin
    v = qkv[:, 2 * group:2 * group + hdim]

    q_bf = q.astype(jnp.bfloat16)
    k_bf = k.astype(jnp.bfloat16)
    v_bf = v.astype(jnp.bfloat16)

    wmid = wmid_ref[...]                     # bf16 (H, INTER + H): [w1 | wo], wo lane-aligned
    w1 = wmid[:, 0:inter]
    wo = wmid[:, inter:inter + hdim]

    # ---- attention: batch folded via block-diagonal mask; per-head wo accumulation ----
    nt_dims = (((1,), (1,)), ((), ()))       # contract dim 1 of both operands == q @ k^T
    acc = jnp.zeros((m, hdim), jnp.float32)
    for h in range(num_heads):               # static unroll, tiny trip count
        cols = slice(h * head_dim, (h + 1) * head_dim)
        s = lax.dot_general(q_bf[:, cols], k_bf[:, cols], dimension_numbers=nt_dims,
                            preferred_element_type=jnp.float32) + mask
        s = s - jnp.max(s, axis=-1, keepdims=True)
        p = jnp.exp(s)
        p = p * pl.reciprocal(jnp.sum(p, axis=-1, keepdims=True), approx=True)
        ctx = jnp.dot(p.astype(jnp.bfloat16), v_bf[:, cols],
                      preferred_element_type=jnp.float32)                     # (M, D)
        # accumulate the output projection per head — no ctx concatenate
        acc = acc + jnp.dot(ctx.astype(jnp.bfloat16), wo[cols, :],
                            preferred_element_type=jnp.float32)
    attn_out = acc + bo
    y = _layer_norm(attn_out + x, ln1_g, ln1_b)           # post-LN residual (f32)

    # ---- FeedForward(out, hidden_state): residual is the ORIGINAL hidden_state x ----
    h1 = jnp.dot(y.astype(jnp.bfloat16), w1, preferred_element_type=jnp.float32) + b1
    # TODO(synk): PyTorch nn.GELU() default is exact erf; tanh variant used for TPU lowering safety.
    h1 = jax.nn.gelu(h1, approximate=True)
    h2 = jnp.dot(h1.astype(jnp.bfloat16), w2_ref[...], preferred_element_type=jnp.float32) + b2
    out = _layer_norm(h2 + x, ln2_g, ln2_b)

    # NOTE: lane-dense (>=128-lane) relayout of the (M, H=32) output intentionally not applied at
    # this size — the in-kernel reshape would cost more than the two masked stores it saves.
    out_ref[...] = out.astype(out_ref.dtype)


# ------------------------------------ wrapper -----------------------------------------
def encoder_layer(hidden_state, attention_mask, params, freqs=None):
    b, s, h = hidden_state.shape
    num_heads = NUM_HEADS
    head_dim = h // num_heads
    m = b * s

    # Guard against silently-wrong mask layouts (review correctness concern).
    assert attention_mask.shape == (b, 1, 1, s), "expected additive attention mask of shape (B,1,1,S)"
    assert jnp.issubdtype(attention_mask.dtype, jnp.floating), "expected an additive (float) mask"

    x2d = hidden_state.reshape(m, h)

    # --- block-diagonal (M, M) additive mask: within-batch blocks carry the per-key mask,
    #     cross-batch entries are -1e9 so exp() underflows to exactly 0 after row-max subtraction.
    key_add = attention_mask.reshape(b, s).astype(jnp.float32).reshape(1, m)   # key j additive val
    batch_ids = jnp.repeat(jnp.arange(b), s)
    same_batch = batch_ids[:, None] == batch_ids[None, :]                      # (M, M)
    mask_full = jnp.where(same_batch, key_add, jnp.float32(-1e9))              # (M, M)

    # --- RoPE angles, tiled per head and per batch row ---
    if freqs is None:
        cos = jnp.ones((s, head_dim), jnp.float32)
        sin = jnp.zeros((s, head_dim), jnp.float32)
    else:
        cos = jnp.cos(freqs).astype(jnp.float32)
        sin = jnp.sin(freqs).astype(jnp.float32)
    cos_full = jnp.tile(jnp.tile(cos, (1, num_heads)), (b, 1))                 # (M, H)
    sin_full = jnp.tile(jnp.tile(sin, (1, num_heads)), (b, 1))                 # (M, H)

    # rotate_half(x @ W + bias) == x @ (W R) + bias R, with R block-diagonal per head.
    half = head_dim // 2
    idx = jnp.arange(half)
    r = jnp.zeros((head_dim, head_dim), jnp.float32)
    r = r.at[idx + half, idx].set(-1.0)
    r = r.at[idx, idx + half].set(1.0)
    rot = jnp.kron(jnp.eye(num_heads, dtype=jnp.float32), r)                   # (H, H)

    # --- fused QKV slab: 5 groups (q, k, v, q_rot, k_rot), each zero-padded to its own 128-lane
    #     block so every in-kernel group slice starts at a vreg boundary.  The softmax scale is
    #     folded into the q / q_rot columns here (one-time wrapper work).
    group = ((h + 127) // 128) * 128
    assert m <= group and h <= group, "toy-config packing assumes M, H <= 128"
    scale = 1.0 / (head_dim ** 0.5)
    wq_s, bq_s = params["wq"] * scale, params["bq"] * scale

    def pad_cols(w):
        return jnp.pad(w, ((0, 0), (0, group - w.shape[1])))

    w_qkv = jnp.concatenate(
        [pad_cols(wq_s), pad_cols(params["wk"]), pad_cols(params["wv"]),
         pad_cols(wq_s @ rot), pad_cols(params["wk"] @ rot)], axis=1).astype(jnp.bfloat16)
    b_qkv = jnp.concatenate(
        [pad_cols(bq_s), pad_cols(params["bk"]), pad_cols(params["bv"]),
         pad_cols(bq_s @ rot), pad_cols(params["bk"] @ rot)], axis=1)          # f32, added post-acc

    # [w1 | wo] slab (wo starts at INTER = 128, i.e. lane-aligned for this config).
    w_mid = jnp.concatenate([params["w1"], params["wo"]], axis=1).astype(jnp.bfloat16)
    w2 = params["w2"].astype(jnp.bfloat16)

    # --- one packed f32 slab for all small operands (single DMA) ---
    width = 5 * group
    rows = m + 8
    rows_pad = ((rows + 7) // 8) * 8
    slab = jnp.zeros((rows_pad, width), jnp.float32)

    def put(sl, row, col, val):
        return sl.at[row:row + val.shape[0], col:col + val.shape[1]].set(val)

    slab = put(slab, 0, 0, mask_full)
    slab = put(slab, 0, group, cos_full)
    slab = put(slab, 0, 2 * group, sin_full)
    slab = put(slab, m, 0, b_qkv)
    slab = put(slab, m + 1, 0, params["b1"])
    slab = put(slab, m + 2, 0, params["bo"])
    slab = put(slab, m + 3, 0, params["b2"])
    slab = put(slab, m + 4, 0, params["ln1_g"])
    slab = put(slab, m + 5, 0, params["ln1_b"])
    slab = put(slab, m + 6, 0, params["ln2_g"])
    slab = put(slab, m + 7, 0, params["ln2_b"])

    kernel = functools.partial(encoder_layer_kernel, num_heads=num_heads, group=group)
    vmem_spec = pl.BlockSpec(memory_space=pltpu.MemorySpace.VMEM)
    # Single grid-less invocation: at (B,S,H)=(2,8,32) every operand fits VMEM many times over and
    # a grid would only add per-step overhead.  At production shapes: row-tiled grid over M with
    # dimension_semantics=("parallel",) (v7x second TensorCore) and a v7x-halved row tile.
    out2d = pl.pallas_call(
        kernel,
        out_shape=jax.ShapeDtypeStruct((m, h), hidden_state.dtype),
        in_specs=[vmem_spec] * 5,
        out_specs=vmem_spec,
    )(x2d, slab, w_qkv, w_mid, w2)
    return out2d.reshape(b, s, h)


# ------------------------------ pure-JAX reference ------------------------------------
def encoder_layer_ref(hidden_state, attention_mask, params, freqs=None):
    x = hidden_state
    b, s, h = x.shape
    if freqs is None:
        cos = jnp.ones((s, HEAD_DIM), jnp.float32)
        sin = jnp.zeros((s, HEAD_DIM), jnp.float32)
    else:
        cos, sin = jnp.cos(freqs), jnp.sin(freqs)

    def heads(t):
        return t.reshape(b, s, NUM_HEADS, HEAD_DIM).transpose(0, 2, 1, 3)

    def rope(t):
        half = HEAD_DIM // 2
        rot = jnp.concatenate([-t[..., half:], t[..., :half]], axis=-1)
        return t * cos + rot * sin

    q = rope(heads(x @ params["wq"] + params["bq"]))
    k = rope(heads(x @ params["wk"] + params["bk"]))
    v = heads(x @ params["wv"] + params["bv"])
    scores = jnp.einsum("bhqd,bhkd->bhqk", q, k) / (HEAD_DIM ** 0.5)
    scores = scores + attention_mask.astype(jnp.float32)          # (B,1,1,S) broadcast
    p = jax.nn.softmax(scores, axis=-1)
    ctx = jnp.einsum("bhqk,bhkd->bhqd", p, v).transpose(0, 2, 1, 3).reshape(b, s, h)
    attn_out = ctx @ params["wo"] + params["bo"]
    y = _layer_norm(attn_out + x, params["ln1_g"], params["ln1_b"])
    ff = jax.nn.gelu(y @ params["w1"] + params["b1"], approximate=True)
    ff = ff @ params["w2"] + params["b2"]
    return _layer_norm(ff + x, params["ln2_g"], params["ln2_b"])


# --------------------------------------- main -----------------------------------------
def make_params(key):
    ks = jax.random.split(key, 8)
    std = 0.02
    return {
        "wq": jax.random.normal(ks[0], (H, H), jnp.float32) * std,
        "bq": jnp.zeros((1, H), jnp.float32),
        "wk": jax.random.normal(ks[1], (H, H), jnp.float32) * std,
        "bk": jnp.zeros((1, H), jnp.float32),
        "wv": jax.random.normal(ks[2], (H, H), jnp.float32) * std,
        "bv": jnp.zeros((1, H), jnp.float32),
        "wo": jax.random.normal(ks[3], (H, H), jnp.float32) * std,
        "bo": jax.random.normal(ks[4], (1, H), jnp.float32) * std,
        "ln1_g": jnp.ones((1, H), jnp.float32),
        "ln1_b": jnp.zeros((1, H), jnp.float32),
        "w1": jax.random.normal(ks[5], (H, INTERMEDIATE), jnp.float32) * std,
        "b1": jax.random.normal(ks[6], (1, INTERMEDIATE), jnp.float32) * std,
        "w2": jax.random.normal(ks[7], (INTERMEDIATE, H), jnp.float32) * std,
        "b2": jnp.zeros((1, H), jnp.float32),
        "ln2_g": jnp.ones((1, H), jnp.float32),
        "ln2_b": jnp.zeros((1, H), jnp.float32),
    }


if __name__ == "__main__":
    key = jax.random.PRNGKey(0)
    k_h, k_p = jax.random.split(key)
    hidden = jax.random.normal(k_h, (B, S, H), jnp.float32)

    # additive mask (B, 1, 1, S): last two positions of batch 1 are masked out
    valid = jnp.ones((B, S), jnp.float32).at[1, -2:].set(0.0)
    attention_mask = ((1.0 - valid) * -1e9).reshape(B, 1, 1, S)

    params = make_params(k_p)

    # RoPE angles (S, HEAD_DIM)
    pos = jnp.arange(S, dtype=jnp.float32)
    inv = 1.0 / (10000.0 ** (jnp.arange(HEAD_DIM // 2, dtype=jnp.float32) / (HEAD_DIM // 2)))
    ang = pos[:, None] * inv[None, :]
    freqs = jnp.concatenate([ang, ang], axis=-1)

    # run without RoPE (freqs=None) and with RoPE; validate both against pure-JAX f32 reference
    out_a = jax.block_until_ready(encoder_layer(hidden, attention_mask, params, freqs=None))
    ref_a = encoder_layer_ref(hidden, attention_mask, params, freqs=None)
    out_b = jax.block_until_ready(encoder_layer(hidden, attention_mask, params, freqs=freqs))
    ref_b = encoder_layer_ref(hidden, attention_mask, params, freqs=freqs)

    assert out_a.shape == (B, S, H) and out_b.shape == (B, S, H)
    assert jnp.all(jnp.isfinite(out_a)) and jnp.all(jnp.isfinite(out_b))
    # tolerance 5e-3 covers bf16 MXU operands (f32 reference weights) + approx softmax reciprocal;
    # a structural bug (wrong mask / residual / RoPE) would be O(1) off and still be caught.
    assert jnp.allclose(out_a, ref_a, atol=5e-3, rtol=5e-3)
    assert jnp.allclose(out_b, ref_b, atol=5e-3, rtol=5e-3)
    print("KERNEL_OK")
</pallas_src>

<mosaic_0001>
module attributes {stable_mosaic.version = 11 : i64} {
  func.func @encoder_layer_kernel(%arg0: memref<16x32xf32, #tpu.memory_space<vmem>>, %arg1: memref<24x640xf32, #tpu.memory_space<vmem>>, %arg2: memref<32x640xbf16, #tpu.memory_space<vmem>>, %arg3: memref<32x160xbf16, #tpu.memory_space<vmem>>, %arg4: memref<128x32xbf16, #tpu.memory_space<vmem>>, %arg5: memref<16x32xf32, #tpu.memory_space<vmem>>) attributes {dimension_semantics = [], scalar_prefetch = 0 : i64, scratch_operands = 0 : i64, tpu.core_type = #tpu.core_type<tc>} {
    %c0 = arith.constant 0 : index
    %c0_0 = arith.constant 0 : index
    %0 = vector.load %arg0[%c0, %c0_0] : memref<16x32xf32, #tpu.memory_space<vmem>>, vector<16x32xf32>
    %1 = arith.truncf %0 : vector<16x32xf32> to vector<16x32xbf16>
    %c0_1 = arith.constant 0 : index
    %c0_2 = arith.constant 0 : index
    %2 = vector.load %arg1[%c0_1, %c0_2] : memref<24x640xf32, #tpu.memory_space<vmem>>, vector<16x16xf32>
    %c0_3 = arith.constant 0 : index
    %c128 = arith.constant 128 : index
    %3 = vector.load %arg1[%c0_3, %c128] : memref<24x640xf32, #tpu.memory_space<vmem>>, vector<16x32xf32>
    %c0_4 = arith.constant 0 : index
    %c256 = arith.constant 256 : index
    %4 = vector.load %arg1[%c0_4, %c256] : memref<24x640xf32, #tpu.memory_space<vmem>>, vector<16x32xf32>
    %c16 = arith.constant 16 : index
    %c0_5 = arith.constant 0 : index
    %5 = vector.load %arg1[%c16, %c0_5] : memref<24x640xf32, #tpu.memory_space<vmem>>, vector<1x640xf32>
    %c17 = arith.constant 17 : index
    %c0_6 = arith.constant 0 : index
    %6 = vector.load %arg1[%c17, %c0_6] : memref<24x640xf32, #tpu.memory_space<vmem>>, vector<1x128xf32>
    %c18 = arith.constant 18 : index
    %c0_7 = arith.constant 0 : index
    %7 = vector.load %arg1[%c18, %c0_7] : memref<24x640xf32, #tpu.memory_space<vmem>>, vector<1x32xf32>
    %c19 = arith.constant 19 : index
    %c0_8 = arith.constant 0 : index
    %8 = vector.load %arg1[%c19, %c0_8] : memref<24x640xf32, #tpu.memory_space<vmem>>, vector<1x32xf32>
    %c20 = arith.constant 20 : index
    %c0_9 = arith.constant 0 : index
    %9 = vector.load %arg1[%c20, %c0_9] : memref<24x640xf32, #tpu.memory_space<vmem>>, vector<1x32xf32>
    %c21 = arith.constant 21 : index
    %c0_10 = arith.constant 0 : index
    %10 = vector.load %arg1[%c21, %c0_10] : memref<24x640xf32, #tpu.memory_space<vmem>>, vector<1x32xf32>
    %c22 = arith.constant 22 : index
    %c0_11 = arith.constant 0 : index
    %11 = vector.load %arg1[%c22, %c0_11] : memref<24x640xf32, #tpu.memory_space<vmem>>, vector<1x32xf32>
    %c23 = arith.constant 23 : index
    %c0_12 = arith.constant 0 : index
    %12 = vector.load %arg1[%c23, %c0_12] : memref<24x640xf32, #tpu.memory_space<vmem>>, vector<1x32xf32>
    %c0_13 = arith.constant 0 : index
    %c0_14 = arith.constant 0 : index
    %13 = vector.load %arg2[%c0_13, %c0_14] : memref<32x640xbf16, #tpu.memory_space<vmem>>, vector<32x640xbf16>
    %cst = arith.constant dense<0.000000e+00> : vector<16x640xf32>
    %14 = tpu.matmul %1, %13, %cst {dimension_numbers = #tpu.dot_dimension_numbers<[1], [0], [0], [1], [0, 0, 1, 1], [], []>} : vector<16x32xbf16>, vector<32x640xbf16>, vector<16x640xf32> -> vector<16x640xf32>
    %15 = vector.broadcast %5 : vector<1x640xf32> to vector<16x640xf32>
    %16 = arith.addf %14, %15 : vector<16x640xf32>
    %17 = vector.extract_strided_slice %16 {offsets = [0, 0], sizes = [16, 32], strides = [1, 1]} : vector<16x640xf32> to vector<16x32xf32>
    %18 = arith.mulf %17, %3 : vector<16x32xf32>
    %19 = vector.extract_strided_slice %16 {offsets = [0, 384], sizes = [16, 32], strides = [1, 1]} : vector<16x640xf32> to vector<16x32xf32>
    %20 = arith.mulf %19, %4 : vector<16x32xf32>
    %21 = arith.addf %18, %20 : vector<16x32xf32>
    %22 = vector.extract_strided_slice %16 {offsets = [0, 128], sizes = [16, 32], strides = [1, 1]} : vector<16x640xf32> to vector<16x32xf32>
    %23 = arith.mulf %22, %3 : vector<16x32xf32>
    %24 = vector.extract_strided_slice %16 {offsets = [0, 512], sizes = [16, 32], strides = [1, 1]} : vector<16x640xf32> to vector<16x32xf32>
    %25 = arith.mulf %24, %4 : vector<16x32xf32>
    %26 = arith.addf %23, %25 : vector<16x32xf32>
    %27 = vector.extract_strided_slice %16 {offsets = [0, 256], sizes = [16, 32], strides = [1, 1]} : vector<16x640xf32> to vector<16x32xf32>
    %28 = arith.truncf %21 : vector<16x32xf32> to vector<16x32xbf16>
    %29 = arith.truncf %26 : vector<16x32xf32> to vector<16x32xbf16>
    %30 = arith.truncf %27 : vector<16x32xf32> to vector<16x32xbf16>
    %c0_15 = arith.constant 0 : index
    %c0_16 = arith.constant 0 : index
    %31 = vector.load %arg3[%c0_15, %c0_16] : memref<32x160xbf16, #tpu.memory_space<vmem>>, vector<32x160xbf16>
    %32 = vector.extract_strided_slice %31 {offsets = [0, 0], sizes = [32, 128], strides = [1, 1]} : vector<32x160xbf16> to vector<32x128xbf16>
    %33 = vector.extract_strided_slice %31 {offsets = [0, 128], sizes = [32, 32], strides = [1, 1]} : vector<32x160xbf16> to vector<32x32xbf16>
    %cst_17 = arith.constant 0.000000e+00 : f32
    %34 = vector.broadcast %cst_17 : f32 to vector<16x32xf32>
    %35 = vector.extract_strided_slice %28 {offsets = [0, 0], sizes = [16, 8], strides = [1, 1]} : vector<16x32xbf16> to vector<16x8xbf16>
    %36 = vector.extract_strided_slice %29 {offsets = [0, 0], sizes = [16, 8], strides = [1, 1]} : vector<16x32xbf16> to vector<16x8xbf16>
    %cst_18 = arith.constant dense<0.000000e+00> : vector<16x16xf32>
    %37 = tpu.matmul %35, %36, %cst_18 {dimension_numbers = #tpu.dot_dimension_numbers<[1], [1], [0], [0], [0, 0, 1, 0], [], []>} : vector<16x8xbf16>, vector<16x8xbf16>, vector<16x16xf32> -> vector<16x16xf32>
    %38 = arith.addf %37, %2 : vector<16x16xf32>
    %cst_19 = arith.constant dense<0xFF800000> : vector<16xf32>
    %39 = vector.multi_reduction <maximumf>, %38, %cst_19 [1] : vector<16x16xf32> to vector<16xf32>
    %40 = vector.shape_cast %39 : vector<16xf32> to vector<16x1xf32>
    %41 = vector.broadcast %40 : vector<16x1xf32> to vector<16x16xf32>
    %42 = arith.subf %38, %41 : vector<16x16xf32>
    %43 = math.exp %42 : vector<16x16xf32>
    %cst_20 = arith.constant dense<0.000000e+00> : vector<16xf32>
    %44 = vector.multi_reduction <add>, %43, %cst_20 [1] : vector<16x16xf32> to vector<16xf32>
    %45 = vector.shape_cast %44 : vector<16xf32> to vector<16x1xf32>
    %46 = tpu.reciprocal %45 {approx = true} : vector<16x1xf32> -> vector<16x1xf32>
    %47 = vector.broadcast %46 : vector<16x1xf32> to vector<16x16xf32>
    %48 = arith.mulf %43, %47 : vector<16x16xf32>
    %49 = arith.truncf %48 : vector<16x16xf32> to vector<16x16xbf16>
    %50 = vector.extract_strided_slice %30 {offsets = [0, 0], sizes = [16, 8], strides = [1, 1]} : vector<16x32xbf16> to vector<16x8xbf16>
    %cst_21 = arith.constant dense<0.000000e+00> : vector<16x8xf32>
    %51 = tpu.matmul %49, %50, %cst_21 {dimension_numbers = #tpu.dot_dimension_numbers<[1], [0], [0], [1], [0, 0, 1, 1], [], []>} : vector<16x16xbf16>, vector<16x8xbf16>, vector<16x8xf32> -> vector<16x8xf32>
    %52 = arith.truncf %51 : vector<16x8xf32> to vector<16x8xbf16>
    %53 = vector.extract_strided_slice %33 {offsets = [0, 0], sizes = [8, 32], strides = [1, 1]} : vector<32x32xbf16> to vector<8x32xbf16>
    %cst_22 = arith.constant dense<0.000000e+00> : vector<16x32xf32>
    %54 = tpu.matmul %52, %53, %cst_22 {dimension_numbers = #tpu.dot_dimension_numbers<[1], [0], [0], [1], [0, 0, 1, 1], [], []>} : vector<16x8xbf16>, vector<8x32xbf16>, vector<16x32xf32> -> vector<16x32xf32>
    %55 = arith.addf %34, %54 : vector<16x32xf32>
    %56 = vector.extract_strided_slice %28 {offsets = [0, 8], sizes = [16, 8], strides = [1, 1]} : vector<16x32xbf16> to vector<16x8xbf16>
    %57 = vector.extract_strided_slice %29 {offsets = [0, 8], sizes = [16, 8], strides = [1, 1]} : vector<16x32xbf16> to vector<16x8xbf16>
    %cst_23 = arith.constant dense<0.000000e+00> : vector<16x16xf32>
    %58 = tpu.matmul %56, %57, %cst_23 {dimension_numbers = #tpu.dot_dimension_numbers<[1], [1], [0], [0], [0, 0, 1, 0], [], []>} : vector<16x8xbf16>, vector<16x8xbf16>, vector<16x16xf32> -> vector<16x16xf32>
    %59 = arith.addf %58, %2 : vector<16x16xf32>
    %cst_24 = arith.constant dense<0xFF800000> : vector<16xf32>
    %60 = vector.multi_reduction <maximumf>, %59, %cst_24 [1] : vector<16x16xf32> to vector<16xf32>
    %61 = vector.shape_cast %60 : vector<16xf32> to vector<16x1xf32>
    %62 = vector.broadcast %61 : vector<16x1xf32> to vector<16x16xf32>
    %63 = arith.subf %59, %62 : vector<16x16xf32>
    %64 = math.exp %63 : vector<16x16xf32>
    %cst_25 = arith.constant dense<0.000000e+00> : vector<16xf32>
    %65 = vector.multi_reduction <add>, %64, %cst_25 [1] : vector<16x16xf32> to vector<16xf32>
    %66 = vector.shape_cast %65 : vector<16xf32> to vector<16x1xf32>
    %67 = tpu.reciprocal %66 {approx = true} : vector<16x1xf32> -> vector<16x1xf32>
    %68 = vector.broadcast %67 : vector<16x1xf32> to vector<16x16xf32>
    %69 = arith.mulf %64, %68 : vector<16x16xf32>
    %70 = arith.truncf %69 : vector<16x16xf32> to vector<16x16xbf16>
    %71 = vector.extract_strided_slice %30 {offsets = [0, 8], sizes = [16, 8], strides = [1, 1]} : vector<16x32xbf16> to vector<16x8xbf16>
    %cst_26 = arith.constant dense<0.000000e+00> : vector<16x8xf32>
    %72 = tpu.matmul %70, %71, %cst_26 {dimension_numbers = #tpu.dot_dimension_numbers<[1], [0], [0], [1], [0, 0, 1, 1], [], []>} : vector<16x16xbf16>, vector<16x8xbf16>, vector<16x8xf32> -> vector<16x8xf32>
    %73 = arith.truncf %72 : vector<16x8xf32> to vector<16x8xbf16>
    %74 = vector.extract_strided_slice %33 {offsets = [8, 0], sizes = [8, 32], strides = [1, 1]} : vector<32x32xbf16> to vector<8x32xbf16>
    %cst_27 = arith.constant dense<0.000000e+00> : vector<16x32xf32>
    %75 = tpu.matmul %73, %74, %cst_27 {dimension_numbers = #tpu.dot_dimension_numbers<[1], [0], [0], [1], [0, 0, 1, 1], [], []>} : vector<16x8xbf16>, vector<8x32xbf16>, vector<16x32xf32> -> vector<16x32xf32>
    %76 = arith.addf %55, %75 : vector<16x32xf32>
    %77 = vector.extract_strided_slice %28 {offsets = [0, 16], sizes = [16, 8], strides = [1, 1]} : vector<16x32xbf16> to vector<16x8xbf16>
    %78 = vector.extract_strided_slice %29 {offsets = [0, 16], sizes = [16, 8], strides = [1, 1]} : vector<16x32xbf16> to vector<16x8xbf16>
    %cst_28 = arith.constant dense<0.000000e+00> : vector<16x16xf32>
    %79 = tpu.matmul %77, %78, %cst_28 {dimension_numbers = #tpu.dot_dimension_numbers<[1], [1], [0], [0], [0, 0, 1, 0], [], []>} : vector<16x8xbf16>, vector<16x8xbf16>, vector<16x16xf32> -> vector<16x16xf32>
    %80 = arith.addf %79, %2 : vector<16x16xf32>
    %cst_29 = arith.constant dense<0xFF800000> : vector<16xf32>
    %81 = vector.multi_reduction <maximumf>, %80, %cst_29 [1] : vector<16x16xf32> to vector<16xf32>
    %82 = vector.shape_cast %81 : vector<16xf32> to vector<16x1xf32>
    %83 = vector.broadcast %82 : vector<16x1xf32> to vector<16x16xf32>
    %84 = arith.subf %80, %83 : vector<16x16xf32>
    %85 = math.exp %84 : vector<16x16xf32>
    %cst_30 = arith.constant dense<0.000000e+00> : vector<16xf32>
    %86 = vector.multi_reduction <add>, %85, %cst_30 [1] : vector<16x16xf32> to vector<16xf32>
    %87 = vector.shape_cast %86 : vector<16xf32> to vector<16x1xf32>
    %88 = tpu.reciprocal %87 {approx = true} : vector<16x1xf32> -> vector<16x1xf32>
    %89 = vector.broadcast %88 : vector<16x1xf32> to vector<16x16xf32>
    %90 = arith.mulf %85, %89 : vector<16x16xf32>
    %91 = arith.truncf %90 : vector<16x16xf32> to vector<16x16xbf16>
    %92 = vector.extract_strided_slice %30 {offsets = [0, 16], sizes = [16, 8], strides = [1, 1]} : vector<16x32xbf16> to vector<16x8xbf16>
    %cst_31 = arith.constant dense<0.000000e+00> : vector<16x8xf32>
    %93 = tpu.matmul %91, %92, %cst_31 {dimension_numbers = #tpu.dot_dimension_numbers<[1], [0], [0], [1], [0, 0, 1, 1], [], []>} : vector<16x16xbf16>, vector<16x8xbf16>, vector<16x8xf32> -> vector<16x8xf32>
    %94 = arith.truncf %93 : vector<16x8xf32> to vector<16x8xbf16>
    %95 = vector.extract_strided_slice %33 {offsets = [16, 0], sizes = [8, 32], strides = [1, 1]} : vector<32x32xbf16> to vector<8x32xbf16>
    %cst_32 = arith.constant dense<0.000000e+00> : vector<16x32xf32>
    %96 = tpu.matmul %94, %95, %cst_32 {dimension_numbers = #tpu.dot_dimension_numbers<[1], [0], [0], [1], [0, 0, 1, 1], [], []>} : vector<16x8xbf16>, vector<8x32xbf16>, vector<16x32xf32> -> vector<16x32xf32>
    %97 = arith.addf %76, %96 : vector<16x32xf32>
    %98 = vector.extract_strided_slice %28 {offsets = [0, 24], sizes = [16, 8], strides = [1, 1]} : vector<16x32xbf16> to vector<16x8xbf16>
    %99 = vector.extract_strided_slice %29 {offsets = [0, 24], sizes = [16, 8], strides = [1, 1]} : vector<16x32xbf16> to vector<16x8xbf16>
    %cst_33 = arith.constant dense<0.000000e+00> : vector<16x16xf32>
    %100 = tpu.matmul %98, %99, %cst_33 {dimension_numbers = #tpu.dot_dimension_numbers<[1], [1], [0], [0], [0, 0, 1, 0], [], []>} : vector<16x8xbf16>, vector<16x8xbf16>, vector<16x16xf32> -> vector<16x16xf32>
    %101 = arith.addf %100, %2 : vector<16x16xf32>
    %cst_34 = arith.constant dense<0xFF800000> : vector<16xf32>
    %102 = vector.multi_reduction <maximumf>, %101, %cst_34 [1] : vector<16x16xf32> to vector<16xf32>
    %103 = vector.shape_cast %102 : vector<16xf32> to vector<16x1xf32>
    %104 = vector.broadcast %103 : vector<16x1xf32> to vector<16x16xf32>
    %105 = arith.subf %101, %104 : vector<16x16xf32>
    %106 = math.exp %105 : vector<16x16xf32>
    %cst_35 = arith.constant dense<0.000000e+00> : vector<16xf32>
    %107 = vector.multi_reduction <add>, %106, %cst_35 [1] : vector<16x16xf32> to vector<16xf32>
    %108 = vector.shape_cast %107 : vector<16xf32> to vector<16x1xf32>
    %109 = tpu.reciprocal %108 {approx = true} : vector<16x1xf32> -> vector<16x1xf32>
    %110 = vector.broadcast %109 : vector<16x1xf32> to vector<16x16xf32>
    %111 = arith.mulf %106, %110 : vector<16x16xf32>
    %112 = arith.truncf %111 : vector<16x16xf32> to vector<16x16xbf16>
    %113 = vector.extract_strided_slice %30 {offsets = [0, 24], sizes = [16, 8], strides = [1, 1]} : vector<16x32xbf16> to vector<16x8xbf16>
    %cst_36 = arith.constant dense<0.000000e+00> : vector<16x8xf32>
    %114 = tpu.matmul %112, %113, %cst_36 {dimension_numbers = #tpu.dot_dimension_numbers<[1], [0], [0], [1], [0, 0, 1, 1], [], []>} : vector<16x16xbf16>, vector<16x8xbf16>, vector<16x8xf32> -> vector<16x8xf32>
    %115 = arith.truncf %114 : vector<16x8xf32> to vector<16x8xbf16>
    %116 = vector.extract_strided_slice %33 {offsets = [24, 0], sizes = [8, 32], strides = [1, 1]} : vector<32x32xbf16> to vector<8x32xbf16>
    %cst_37 = arith.constant dense<0.000000e+00> : vector<16x32xf32>
    %117 = tpu.matmul %115, %116, %cst_37 {dimension_numbers = #tpu.dot_dimension_numbers<[1], [0], [0], [1], [0, 0, 1, 1], [], []>} : vector<16x8xbf16>, vector<8x32xbf16>, vector<16x32xf32> -> vector<16x32xf32>
    %118 = arith.addf %97, %117 : vector<16x32xf32>
    %119 = vector.broadcast %7 : vector<1x32xf32> to vector<16x32xf32>
    %120 = arith.addf %118, %119 : vector<16x32xf32>
    %121 = arith.addf %120, %0 : vector<16x32xf32>
    %cst_38 = arith.constant dense<0.000000e+00> : vector<16xf32>
    %122 = vector.multi_reduction <add>, %121, %cst_38 [1] : vector<16x32xf32> to vector<16xf32>
    %123 = vector.shape_cast %122 : vector<16xf32> to vector<16x1xf32>
    %cst_39 = arith.constant 3.200000e+01 : f32
    %124 = vector.broadcast %cst_39 : f32 to vector<16x1xf32>
    %125 = arith.divf %123, %124 : vector<16x1xf32>
    %126 = vector.broadcast %125 : vector<16x1xf32> to vector<16x32xf32>
    %127 = arith.subf %121, %126 : vector<16x32xf32>
    %128 = arith.mulf %127, %127 : vector<16x32xf32>
    %cst_40 = arith.constant dense<0.000000e+00> : vector<16xf32>
    %129 = vector.multi_reduction <add>, %128, %cst_40 [1] : vector<16x32xf32> to vector<16xf32>
    %130 = vector.shape_cast %129 : vector<16xf32> to vector<16x1xf32>
    %cst_41 = arith.constant 3.200000e+01 : f32
    %131 = vector.broadcast %cst_41 : f32 to vector<16x1xf32>
    %132 = arith.divf %130, %131 : vector<16x1xf32>
    %133 = vector.broadcast %125 : vector<16x1xf32> to vector<16x32xf32>
    %134 = arith.subf %121, %133 : vector<16x32xf32>
    %cst_42 = arith.constant 9.99999974E-6 : f32
    %135 = vector.broadcast %cst_42 : f32 to vector<16x1xf32>
    %136 = arith.addf %132, %135 : vector<16x1xf32>
    %137 = math.rsqrt %136 : vector<16x1xf32>
    %138 = vector.broadcast %137 : vector<16x1xf32> to vector<16x32xf32>
    %139 = arith.mulf %134, %138 : vector<16x32xf32>
    %140 = vector.broadcast %9 : vector<1x32xf32> to vector<16x32xf32>
    %141 = arith.mulf %139, %140 : vector<16x32xf32>
    %142 = vector.broadcast %10 : vector<1x32xf32> to vector<16x32xf32>
    %143 = arith.addf %141, %142 : vector<16x32xf32>
    %144 = arith.truncf %143 : vector<16x32xf32> to vector<16x32xbf16>
    %cst_43 = arith.constant dense<0.000000e+00> : vector<16x128xf32>
    %145 = tpu.matmul %144, %32, %cst_43 {dimension_numbers = #tpu.dot_dimension_numbers<[1], [0], [0], [1], [0, 0, 1, 1], [], []>} : vector<16x32xbf16>, vector<32x128xbf16>, vector<16x128xf32> -> vector<16x128xf32>
    %146 = vector.broadcast %6 : vector<1x128xf32> to vector<16x128xf32>
    %147 = arith.addf %145, %146 : vector<16x128xf32>
    %148 = arith.mulf %147, %147 : vector<16x128xf32>
    %149 = arith.mulf %147, %148 : vector<16x128xf32>
    %cst_44 = arith.constant 4.471500e-02 : f32
    %150 = vector.broadcast %cst_44 : f32 to vector<16x128xf32>
    %151 = arith.mulf %150, %149 : vector<16x128xf32>
    %152 = arith.addf %147, %151 : vector<16x128xf32>
    %cst_45 = arith.constant 0.797884583 : f32
    %153 = vector.broadcast %cst_45 : f32 to vector<16x128xf32>
    %154 = arith.mulf %153, %152 : vector<16x128xf32>
    %155 = math.tanh %154 : vector<16x128xf32>
    %cst_46 = arith.constant 1.000000e+00 : f32
    %156 = vector.broadcast %cst_46 : f32 to vector<16x128xf32>
    %157 = arith.addf %156, %155 : vector<16x128xf32>
    %cst_47 = arith.constant 5.000000e-01 : f32
    %158 = vector.broadcast %cst_47 : f32 to vector<16x128xf32>
    %159 = arith.mulf %158, %157 : vector<16x128xf32>
    %160 = arith.mulf %147, %159 : vector<16x128xf32>
    %161 = arith.truncf %160 : vector<16x128xf32> to vector<16x128xbf16>
    %c0_48 = arith.constant 0 : index
    %c0_49 = arith.constant 0 : index
    %162 = vector.load %arg4[%c0_48, %c0_49] : memref<128x32xbf16, #tpu.memory_space<vmem>>, vector<128x32xbf16>
    %cst_50 = arith.constant dense<0.000000e+00> : vector<16x32xf32>
    %163 = tpu.matmul %161, %162, %cst_50 {dimension_numbers = #tpu.dot_dimension_numbers<[1], [0], [0], [1], [0, 0, 1, 1], [], []>} : vector<16x128xbf16>, vector<128x32xbf16>, vector<16x32xf32> -> vector<16x32xf32>
    %164 = vector.broadcast %8 : vector<1x32xf32> to vector<16x32xf32>
    %165 = arith.addf %163, %164 : vector<16x32xf32>
    %166 = arith.addf %165, %0 : vector<16x32xf32>
    %cst_51 = arith.constant dense<0.000000e+00> : vector<16xf32>
    %167 = vector.multi_reduction <add>, %166, %cst_51 [1] : vector<16x32xf32> to vector<16xf32>
    %168 = vector.shape_cast %167 : vector<16xf32> to vector<16x1xf32>
    %cst_52 = arith.constant 3.200000e+01 : f32
    %169 = vector.broadcast %cst_52 : f32 to vector<16x1xf32>
    %170 = arith.divf %168, %169 : vector<16x1xf32>
    %171 = vector.broadcast %170 : vector<16x1xf32> to vector<16x32xf32>
    %172 = arith.subf %166, %171 : vector<16x32xf32>
    %173 = arith.mulf %172, %172 : vector<16x32xf32>
    %cst_53 = arith.constant dense<0.000000e+00> : vector<16xf32>
    %174 = vector.multi_reduction <add>, %173, %cst_53 [1] : vector<16x32xf32> to vector<16xf32>
    %175 = vector.shape_cast %174 : vector<16xf32> to vector<16x1xf32>
    %cst_54 = arith.constant 3.200000e+01 : f32
    %176 = vector.broadcast %cst_54 : f32 to vector<16x1xf32>
    %177 = arith.divf %175, %176 : vector<16x1xf32>
    %178 = vector.broadcast %170 : vector<16x1xf32> to vector<16x32xf32>
    %179 = arith.subf %166, %178 : vector<16x32xf32>
    %cst_55 = arith.constant 9.99999974E-6 : f32
    %180 = vector.broadcast %cst_55 : f32 to vector<16x1xf32>
    %181 = arith.addf %177, %180 : vector<16x1xf32>
    %182 = math.rsqrt %181 : vector<16x1xf32>
    %183 = vector.broadcast %182 : vector<16x1xf32> to vector<16x32xf32>
    %184 = arith.mulf %179, %183 : vector<16x32xf32>
    %185 = vector.broadcast %11 : vector<1x32xf32> to vector<16x32xf32>
    %186 = arith.mulf %184, %185 : vector<16x32xf32>
    %187 = vector.broadcast %12 : vector<1x32xf32> to vector<16x32xf32>
    %188 = arith.addf %186, %187 : vector<16x32xf32>
    %c0_56 = arith.constant 0 : index
    %c0_57 = arith.constant 0 : index
    %189 = vector.load %arg5[%c0_56, %c0_57] : memref<16x32xf32, #tpu.memory_space<vmem>>, vector<16x32xf32>
    tpu.vector_store %arg5[%c0_56, %c0_57], %188 {strides = array<i32>} : memref<16x32xf32, #tpu.memory_space<vmem>>, vector<16x32xf32>,
    return
  }
}

</mosaic_0001>

<bundles_post_ra>
// kernel: tpu_custom_call.1
= control target key start
LH: loop header
LB: loop body
LE: loop exit
PB: predicated region body
PF: predicated region fallthrough
CT: control target
= control target key end

     0   :  { %10 = vsyncpa [#allocation3], 0  ;;  %s1974_s0 = inlined_call_operand.hbm [shape: f32[16,32], index: 0, kind: input, shape index: {}]   ;;  %s1975_s1 = inlined_call_operand.hbm [shape: f32[24,640], index: 1, kind: input, shape index: {}]   ;;  %s1976_s2 = inlined_call_operand.vmem [shape: bf16[32,640], index: 2, kind: input, shape index: {}]   ;;  %s1977_s3 = inlined_call_operand.hbm [shape: bf16[32,160], index: 3, kind: input, shape index: {}]   ;;  %s1978_s4 = inlined_call_operand.vmem [shape: bf16[128,32], index: 4, kind: input, shape index: {}]   ;;  %s1979_s5 = inlined_call_operand.hbm [shape: f32[16,32], index: 5, kind: output, shape index: {}]  }
   0x1   :  { %11 = vsyncpa [#allocation6], 0 }
   0x2   :  { %12 = vsyncpa [#allocation4], 0  ;;  %s1645_s18 = smov [#allocation5]   ;;  %s1551_s22 = scalar_lea.hbm %s1975_s1, 1920 }
   0x3   :  { %s30_s19 = sshll.u32 %s1645_s18, 4  ;;  %p1552_p0 = scmp.ne.s32.totalorder %s1975_s1, %s1551_s22  ;;  %s31_s19 = int_to_ptr.vmem [resolvable:$true] %s30_s19 }
   0x4   :  { %p1555_p1 = scmp.lt.u32.totalorder %s1551_s22, %s1975_s1 }
   0x6   :  { %p1557_p2 = pnand %p1555_p1, %p1552_p0 }
   0x8   :  { %1560 = shalt.err (!%p1557_p2)
}
   0x9   :  { %s1561_s27 = scalar_lea.vmem %s31_s19, 1920  ;;  %p1566_p4 = scmp.lt.s32.totalorder %s31_s19, %s31_s19 }
   0xa   :  { %p1562_p3 = scmp.ne.s32.totalorder %s31_s19, %s1561_s27  ;;  %p1567_p5 = scmp.lt.s32.totalorder %s1561_s27, %s1561_s27 }
   0xc   :  { %p1568_p6 = por %p1567_p5, %p1566_p4 }
   0xe   :  { %p1569_p7 = pnand %p1568_p6, %p1562_p3 }
  0x10   :  { %1572 = shalt.err (!%p1569_p7)
}
  0x11   :  { %s1646_s28 = smov 640   ;;  %s1647_s29 = smov 40  }
  0x12   :  { %36 = dma.hbm_to_vmem [thread:$0]  %s1975_s1, 1920, %s31_s19, [#allocation6], %s1646_s28, %s1646_s28, %s1647_s29  }
  0x13   :  { %s1648_s7 = smov [#allocation2]   ;;  %s1573_s11 = scalar_lea.hbm %s1974_s0, 256 }
  0x14   :  { %s18_s8 = sshll.u32 %s1648_s7, 4  ;;  %p1574_p8 = scmp.ne.s32.totalorder %s1974_s0, %s1573_s11  ;;  %s19_s8 = int_to_ptr.vmem [resolvable:$true] %s18_s8 }
  0x15   :  { %p1577_p9 = scmp.lt.u32.totalorder %s1573_s11, %s1974_s0 }
  0x17   :  { %p1579_p10 = pnand %p1577_p9, %p1574_p8 }
  0x19   :  { %1582 = shalt.err (!%p1579_p10)
}
  0x1a   :  { %s1583_s16 = scalar_lea.vmem %s19_s8, 256  ;;  %p1588_p12 = scmp.lt.s32.totalorder %s19_s8, %s19_s8 }
  0x1b   :  { %p1584_p11 = scmp.ne.s32.totalorder %s19_s8, %s1583_s16  ;;  %p1589_p13 = scmp.lt.s32.totalorder %s1583_s16, %s1583_s16 }
  0x1d   :  { %p1590_p0 = por %p1589_p13, %p1588_p12 }
  0x1f   :  { %p1591_p1 = pnand %p1590_p0, %p1584_p11 }
  0x21   :  { %1594 = shalt.err (!%p1591_p1)
}
  0x22   :  { %s1649_s1 = smov 128   ;;  %s1650_s17 = smov 8  }
  0x23   :  { %24 = dma.hbm_to_vmem [thread:$0]  %s1974_s0, 256, %s19_s8, [#allocation3], %s1649_s1, %s1649_s1, %s1650_s17  }
  0x24   :  { %s1651_s20 = smov [#allocation7]   ;;  %s1595_s24 = scalar_lea.hbm %s1977_s3, 512 }
  0x25   :  { %s44_s21 = sshll.u32 %s1651_s20, 4  ;;  %p1596_p2 = scmp.ne.s32.totalorder %s1977_s3, %s1595_s24  ;;  %s45_s21 = int_to_ptr.vmem [resolvable:$true] %s44_s21 }
  0x26   :  { %p1599_p3 = scmp.lt.u32.totalorder %s1595_s24, %s1977_s3 }
  0x28   :  { %p1601_p4 = pnand %p1599_p3, %p1596_p2 }
  0x2a   :  { %1604 = shalt.err (!%p1601_p4)
}
  0x2b   :  { %s1605_s29 = scalar_lea.vmem %s45_s21, 512  ;;  %p1610_p6 = scmp.lt.s32.totalorder %s45_s21, %s45_s21 }
  0x2c   :  { %p1606_p5 = scmp.ne.s32.totalorder %s45_s21, %s1605_s29  ;;  %p1611_p7 = scmp.lt.s32.totalorder %s1605_s29, %s1605_s29 }
  0x2e   :  { %p1612_p8 = por %p1611_p7, %p1610_p6 }
  0x30   :  { %p1613_p9 = pnand %p1612_p8, %p1606_p5 }
  0x32   :  { %1616 = shalt.err (!%p1613_p9)
}
  0x33   :  { %50 = dma.hbm_to_vmem [thread:$0]  %s1977_s3, 512, %s45_s21, [#allocation6], %s1649_s1, %s1649_s1, %s1650_s17  }
  0x34   :  { %1639 = dma.done.wait [#allocation3], 256  }
  0x35   :  { %1640 = vsyncadd [#allocation3], 4294967040 }
  0x36   :  { %1641 = dma.done.wait [#allocation6], 2432  }
  0x37   :  { %1642 = vsyncadd [#allocation6], 4294964864  ;;  %v1652_v0 = vmov 0   ;;  %v1653_v1 = vmov 0.0   ;;  %vm1654_vm0 = vmmov 0   ;;  %v1746_v6 = vld [vmem:[#allocation2] sm:$0xff]  ;;  %v96_v15 = vlaneseq }
  0x38   :  { %209 = vmatprep.mubr.bf16.mxu1 %v1652_v0  ;;  %1371 = vmatprep.subr.bf16.mxu0 %v1653_v1  ;;  %v1479_v2 = vld [vmem:[%s1976_s2 + $0x4] ss:$20 sps:$4 sm:$0xff]   ;;  %v1481_v3 = vld [vmem:[%s1976_s2] ss:$20 sps:$4 sm:$0xff]   ;;  %v1484_v5 = vld [vmem:[%s1976_s2 + $0x28] ss:$20 sps:$4 sm:$0xff]  }
  0x39   :  { %1373 = vmatprep.mubr.msk.bf16.mxu0 %vm1654_vm0, %v1653_v1  ;;  %177 = vmatprep.subr.bf16.mxu1 %v1479_v2  ;;  %v1482_v4 = vld [vmem:[%s1976_s2 + $0x2c] ss:$20 sps:$4 sm:$0xff]   ;;  %vm173_vm1 = vcmask 261120   ;;  %v1485_v10 = vld [vmem:[%s1976_s2 + $0x8] ss:$20 sps:$4 sm:$0xff]   ;;  %v97_v16 = vshrl.u32 %v96_v15, 7 }
  0x3a   :  { %178 = vmatpush1.bf16.msra.mxu1 %v1481_v3  ;;  %v1748_v7 = vld [vmem:[#allocation2 + $0x8] sm:$0xff]  ;;  %v1488_v12 = vld [vmem:[%s1976_s2 + $0x30] ss:$20 sps:$4 sm:$0xff]   ;;  %v74_v18 = vld [vmem:[#allocation5 + $0x50] ss:$8 sm:$0x10] }
  0x3b   :  { %179 = vmatprep.subr.bf16.mxu1 %v1482_v4  ;;  %v1487_v8 = vld [vmem:[%s1976_s2 + $0xc] ss:$20 sps:$4 sm:$0xff]   ;;  %v65_v9 = vpack.c.bf16 %v1748_v7, %v1746_v6  ;;  %v1490_v11 = vld [vmem:[%s1976_s2 + $0x34] ss:$20 sps:$4 sm:$0xff]   ;;  %v1491_v13 = vld [vmem:[%s1976_s2 + $0x10] ss:$20 sps:$4 sm:$0xff]  }
  0x3c   :  { %v1492_v14 = vld [vmem:[%s1976_s2 + $0x38] ss:$20 sps:$4 sm:$0xff]   ;;  %v98_v20 = vsub.s32 0, %v97_v16  ;;  %v110_v24 = vsub.s32 3, %v97_v16  ;;  %v106_v26 = vsub.s32 2, %v97_v16  ;;  %v102_v29 = vsub.s32 1, %v97_v16 }
  0x3d   :  { %v73_v17 = vld [vmem:[#allocation5 + $0x50] ss:$8 sm:$0xf]  ;;  %v114_v36 = vsub.s32 4, %v97_v16  ;;  %vm323_vm2 = vcmask 64512   ;;  %s1655_s2 = smov 120  }
  0x3e   :  { %180 = vmatpush1.bf16.msra.mxu1 %v1484_v5  ;;  %v75_v19 = vor.u32 %v74_v18, %v73_v17  ;;  %v68_v33 = vld [vmem:[#allocation5 + $0x8] sm:$0xff]  ;;  %v70_v34 = vld [vmem:[#allocation5 + $0x10] sm:$0xff]  ;;  %v71_v44 = vld [vmem:[#allocation5 + $0x38] sm:$0xff]  ;;  %vm371_vm3 = vcmask 130048   ;;  %s1656_s26 = smov 112   ;;  %vm571_vm4 = vcmask 1043456  }
  0x3f   :  { %220 = vmatprep.subr.bf16.mxu1 %v1487_v8  ;;  %v69_v41 = vld [vmem:[#allocation5 + $0x30] sm:$0xff]  ;;  %v1806_v16 = vld [vmem:[#allocation5 + $0x28] sm:$0xff]  ;;  %s1657_s27 = smov 104  }
  0x40   :  { %v99_v27 = vrot.slane %v75_v19, %v98_v20  ;;  %v111_v28 = vrot.slane %v75_v19, %v110_v24  ;;  %v107_v30 = vrot.slane %v75_v19, %v106_v26  ;;  %v103_v40 = vrot.slane %v75_v19, %v102_v29 }
  0x41   :  { %1288 = vmatmul.mubr.msk.bf16.vlgmr.msra.gmra.mrb[0].mxu1 %vm173_vm1, %v65_v9  ;;  %v115_v50 = vrot.slane %v75_v19, %v114_v36 }
  0x42   :  { %221 = vmatpush1.bf16.msra.mxu1 %v1485_v10  ;;  %252 = vmatprep.mubr.bf16.mxu1 %v1652_v0 }
  0x43   :  { %222 = vmatprep.subr.bf16.mxu1 %v1490_v11 }
  0x46   :  { %223 = vmatpush1.bf16.msra.mxu1 %v1488_v12 }
  0x47   :  { %1357 = vmatprep.subr.bf16.mxu1 %v1653_v1 }
  0x49   :  { %1289 = vmatmul.mubr.msk.bf16.vlgmr.msra.gmra.mrb[4].mxu1 %vm173_vm1, %v65_v9 }
  0x4a   :  { %1358 = vmatpush3.bf16.msra.mxu1 %v1491_v13  ;;  %1361 = vmatprep.mubr.msk.bf16.mxu1 %vm1654_vm0, %v1653_v1 }
  0x4b   :  { %1359 = vmatprep.subr.bf16.mxu1 %v1653_v1 }
  0x4e   :  { %1360 = vmatpush3.bf16.msra.mxu1 %v1492_v14  ;;  %v1804_v14 = vld [vmem:[#allocation5] sm:$0xff] }
  0x4f   :  { %1365 = vmatprep.subr.bf16.mxu1 %v1653_v1 }
  0x51   :  { %1362 = vmatmul.mubr.msk.bf16.vlgmr.msra.gmra.mrb[8].mxu1 %vm173_vm1, %v65_v9 }
  0x52   :  { %1367 = vmatprep.mubr.msk.bf16.mxu1 %vm1654_vm0, %v1653_v1 }
 0x114   :  { %v211_v21 = vpop.f32.mrb[0].mxu1 }
 0x115   :  { %v213_v22 = vpop.f32.mrb[1].mxu1  ;;  %v212_v31 = vadd.f32 %v211_v21, %v99_v27 }
 0x116   :  { %v215_v23 = vpop.f32.mrb[2].mxu1  ;;  %v214_v54 = vadd.f32 %v213_v22, %v103_v40 }
 0x117   :  { %v217_v25 = vpop.f32.mrb[3].mxu1  ;;  %v216_v37 = vadd.f32 %v215_v23, %v99_v27  ;;  %v304_v46 = vmul.f32 %v212_v31, %v68_v33 }
 0x118   :  { %v218_v57 = vadd.f32 %v217_v25, %v103_v40  ;;  %v310_v62 = vmul.f32 %v214_v54, %v68_v33 }
 0x119   :  { %v305_v51 = vmul.f32 %v216_v37, %v69_v41 }
 0x11a   :  { %v311_v3 = vmul.f32 %v218_v57, %v69_v41 }
 0x11c   :  { %v254_v32 = vpop.f32.mrb[4].mxu1 }
 0x11d   :  { %v256_v35 = vpop.f32.mrb[5].mxu1  ;;  %v255_v42 = vadd.f32 %v254_v32, %v107_v30 }
 0x11e   :  { %v257_v38 = vadd.f32 %v256_v35, %v111_v28  ;;  %v258_v39 = vpop.f32.mrb[6].mxu1 }
 0x11f   :  { %v259_v43 = vadd.f32 %v258_v39, %v107_v30  ;;  %v260_v45 = vpop.f32.mrb[7].mxu1 }
 0x120   :  { %v306_v47 = vmul.f32 %v257_v38, %v70_v34  ;;  %v261_v48 = vadd.f32 %v260_v45, %v111_v28 }
 0x121   :  { %v1780_v49 = vpack.c.bf16 %v259_v43, %v255_v42 }
 0x122   :  { %v308_v52 = vadd.f32 %v306_v47, %v304_v46  ;;  %v307_v53 = vmul.f32 %v261_v48, %v71_v44 }
 0x123   :  { %1372 = vmatpush3.bf16.msra.mxu0 %v1780_v49 }
 0x124   :  { %v309_v55 = vadd.f32 %v307_v53, %v305_v51  ;;  %v297_v56 = vpop.f32.mrb[8].mxu1  ;;  %1383 = vmatprep.subr.bf16.mxu0 %v1653_v1 }
 0x125   :  { %v298_v58 = vadd.f32 %v297_v56, %v115_v50  ;;  %v1363_v59 = vpop.f32.mrb[9].mxu1 }
 0x126   :  { %v1784_v60 = vpack.c.bf16 %v309_v55, %v308_v52  ;;  %v300_v61 = vpop.f32.mrb[10].mxu1 }
 0x127   :  { %v312_v63 = vmul.f32 %v298_v58, %v70_v34  ;;  %v301_v0 = vadd.f32 %v300_v61, %v115_v50  ;;  %v1364_v2 = vpop.f32.mrb[11].mxu1  ;;  %v1829_v61 = vld [vmem:[#allocation7 + $0x8] sm:$0xff] }
 0x129   :  { %v314_v4 = vadd.f32 %v312_v63, %v310_v62  ;;  %v313_v5 = vmul.f32 %v301_v0, %v71_v44  ;;  %v1295_v62 = vcombine.high %v1829_v61, %v1829_v61 }
 0x12b   :  { %v315_v8 = vadd.f32 %v313_v5, %v311_v3  ;;  %v573_v63 = vsel %vm571_vm4, %v1295_v62, 0 }
 0x12d   :  { %v1786_v9 = vpack.c.bf16 %v315_v8, %v314_v4  ;;  %v1836_v4 = vld [vmem:[#allocation7] sm:$0xff] }
 0x12e   :  { %v1297_v8 = vcombine.high %v1836_v4, %v1836_v4 }
 0x12f   :  { %444 = vrot.lane.b32.xlu0 %v1786_v9, %s1655_s2  ;;  %v328_v10 = vsel %vm323_vm2, %v1786_v9, 0 }
 0x130   :  { %1366 = vmatpush3.bf16.xpose.msra.mxu1 %v328_v10 }
 0x131   :  { %1377 = vmatprep.subr.bf16.mxu1 %v1653_v1 }
 0x133   :  { %441 = vrot.lane.b32.xlu0 %v1784_v60, %s1655_s2 }
 0x137   :  { %1368 = vmatmul.mubr.msk.bf16.vlgmr.msra.gmra.mrb[12].mxu1 %vm323_vm2, %v1784_v60 }
 0x138   :  { %1379 = vmatprep.mubr.msk.bf16.mxu1 %vm1654_vm0, %v1653_v1 }
 0x1a1   :  { %v445_v11 = vpop.permute.xlu0 %444 }
 0x1a2   :  { %v450_v12 = vsel %vm323_vm2, %v445_v11, 0 }
 0x1a3   :  { %1378 = vmatpush3.bf16.xpose.msra.mxu1 %v450_v12 }
 0x1a4   :  { %1389 = vmatprep.subr.bf16.mxu1 %v1653_v1 }
 0x1a5   :  { %v442_v13 = vpop.permute.xlu0 %441 }
 0x1aa   :  { %1380 = vmatmul.mubr.msk.bf16.vlgmr.msra.gmra.mrb[16].mxu1 %vm323_vm2, %v442_v13 }
 0x1ab   :  { %1391 = vmatprep.mubr.msk.bf16.mxu1 %vm1654_vm0, %v1653_v1  ;;  %1390 = vmatpush3.bf16.msra.mxu1 %v573_v63 }
 0x1ac   :  { %1401 = vmatprep.subr.bf16.mxu1 %v1653_v1 }
 0x20a   :  { %v364_v15 = vpop.f32.mrb[12].mxu1 }
 0x20b   :  { %v365_v17 = vadd.f32 %v364_v15, %v1804_v14  ;;  %v1369_v18 = vpop.f32.mrb[13].mxu1  ;;  %v623_v15 = vsel %vm571_vm4, %v1297_v8, 0 }
 0x20c   :  { %v367_v19 = vpop.f32.mrb[14].mxu1 }
 0x20d   :  { %v368_v20 = vadd.f32 %v367_v19, %v1806_v16  ;;  %v1370_v21 = vpop.f32.mrb[15].mxu1  ;;  %v372_v22 = vsel %vm371_vm3, %v365_v17, -inf }
 0x20e   :  { %373 = vmax.xlane.f32.xlu1 %v372_v22 }
 0x20f   :  { %v375_v23 = vsel %vm371_vm3, %v368_v20, -inf }
 0x212   :  { %376 = vmax.xlane.f32.xlu1 %v375_v23 }
 0x27d   :  { %v486_v24 = vpop.f32.mrb[16].mxu1 }
 0x27e   :  { %v487_v25 = vadd.f32 %v486_v24, %v1804_v14  ;;  %v1381_v26 = vpop.f32.mrb[17].mxu1 }
 0x27f   :  { %v489_v27 = vpop.f32.mrb[18].mxu1 }
 0x280   :  { %v490_v28 = vadd.f32 %v489_v27, %v1806_v16  ;;  %v1382_v29 = vpop.f32.mrb[19].mxu1  ;;  %v493_v30 = vsel %vm371_vm3, %v487_v25, -inf }
 0x281   :  { %494 = vmax.xlane.f32.xlu0 %v493_v30 }
 0x282   :  { %v496_v31 = vsel %vm371_vm3, %v490_v28, -inf }
 0x283   :  { %497 = vmax.xlane.f32.xlu1 %v496_v31 }
 0x297   :  { %668 = vrot.lane.b32.xlu0 %v1786_v9, %s1656_s26 }
 0x29b   :  { %v374_v32 = vpop.xlane.xlu1 %373 }
 0x29c   :  { %v378_v33 = vsub.f32 %v365_v17, %v374_v32 }
 0x29e   :  { %v380_v34 = vmul.f32 1.442695, %v378_v33 }
 0x29f   :  { %v377_v35 = vpop.xlane.xlu1 %376 }
 0x2a0   :  { %1507 = vpow2.f32 %v380_v34  ;;  %v379_v36 = vsub.f32 %v368_v20, %v377_v35 }
 0x2a2   :  { %v382_v37 = vmul.f32 1.442695, %v379_v36 }
 0x2a4   :  { %1509 = vpow2.f32 %v382_v37 }
 0x2aa   :  { %v1508_v38 = vpop.eup %1507 }
 0x2ab   :  { %v384_v39 = vsel %vm371_vm3, %v1508_v38, 0.0 }
 0x2ac   :  { %385 = vadd.xlane.f32.xlu1 %v384_v39 }
 0x2ae   :  { %v1510_v40 = vpop.eup %1509 }
 0x2af   :  { %v387_v41 = vsel %vm371_vm3, %v1510_v40, 0.0 }
 0x2b0   :  { %388 = vadd.xlane.f32.xlu1 %v387_v41 }
 0x30e   :  { %v495_v42 = vpop.xlane.xlu0 %494 }
 0x30f   :  { %v499_v43 = vsub.f32 %v487_v25, %v495_v42 }
 0x310   :  { %v498_v44 = vpop.xlane.xlu1 %497 }
 0x311   :  { %v501_v45 = vmul.f32 1.442695, %v499_v43  ;;  %v500_v46 = vsub.f32 %v490_v28, %v498_v44 }
 0x312   :  { %v669_v24 = vpop.permute.xlu0 %668 }
 0x313   :  { %1511 = vpow2.f32 %v501_v45  ;;  %v503_v47 = vmul.f32 1.442695, %v500_v46  ;;  %v674_v28 = vsel %vm323_vm2, %v669_v24, 0 }
 0x315   :  { %1513 = vpow2.f32 %v503_v47 }
 0x31d   :  { %v1512_v48 = vpop.eup %1511 }
 0x31e   :  { %v505_v50 = vsel %vm371_vm3, %v1512_v48, 0.0 }
 0x31f   :  { %v1514_v51 = vpop.eup %1513  ;;  %506 = vadd.xlane.f32.xlu1 %v505_v50 }
 0x320   :  { %v508_v52 = vsel %vm371_vm3, %v1514_v51, 0.0 }
 0x323   :  { %509 = vadd.xlane.f32.xlu1 %v508_v52 }
 0x334   :  { %517 = vrot.lane.b32.xlu1 %v1780_v49, %s1655_s2 }
 0x338   :  { %666 = vrot.lane.b32.xlu1 %v1784_v60, %s1656_s26 }
 0x339   :  { %v386_v53 = vpop.xlane.xlu1 %385 }
 0x33a   :  { %1515 = vrcp.f32 %v386_v53 }
 0x33d   :  { %v389_v54 = vpop.xlane.xlu1 %388 }
 0x33e   :  { %1517 = vrcp.f32 %v389_v54 }
 0x344   :  { %v1516_v55 = vpop.eup %1515 }
 0x345   :  { %v392_v57 = vmul.f32 %v1516_v55, %v1508_v38 }
 0x348   :  { %v1518_v56 = vpop.eup %1517 }
 0x349   :  { %v393_v58 = vmul.f32 %v1518_v56, %v1510_v40 }
 0x34b   :  { %v394_v59 = vpack.c.bf16 %v393_v58, %v392_v57 }
 0x34d   :  { %1374 = vmatmul.mubr.msk.bf16.vlgmr.msra.gmra.mrb[0].mxu0 %vm371_vm3, %v394_v59 }
 0x34e   :  { %1385 = vmatprep.mubr.msk.bf16.mxu0 %vm1654_vm0, %v1653_v1 }
 0x3ac   :  { %v507_v0 = vpop.xlane.xlu1 %506 }
 0x3ad   :  { %1519 = vrcp.f32 %v507_v0 }
 0x3b0   :  { %v510_v2 = vpop.xlane.xlu1 %509 }
 0x3b1   :  { %1521 = vrcp.f32 %v510_v2 }
 0x3b4   :  { %v518_v3 = vpop.permute.xlu1 %517 }
 0x3b5   :  { %1384 = vmatpush3.bf16.msra.mxu0 %v518_v3 }
 0x3b6   :  { %1395 = vmatprep.subr.bf16.mxu0 %v1653_v1 }
 0x3b7   :  { %v1520_v5 = vpop.eup %1519 }
 0x3b8   :  { %v513_v11 = vmul.f32 %v1520_v5, %v1512_v48  ;;  %v667_v29 = vpop.permute.xlu1 %666 }
 0x3bb   :  { %v1522_v10 = vpop.eup %1521 }
 0x3bc   :  { %v514_v12 = vmul.f32 %v1522_v10, %v1514_v51 }
 0x3be   :  { %v515_v13 = vpack.c.bf16 %v514_v12, %v513_v11 }
 0x3c0   :  { %1386 = vmatmul.mubr.msk.bf16.vlgmr.msra.gmra.mrb[4].mxu0 %vm371_vm3, %v515_v13 }
 0x3c1   :  { %1396 = vmatpush3.bf16.msra.mxu0 %v623_v15  ;;  %1397 = vmatprep.mubr.msk.bf16.mxu0 %vm1654_vm0, %v1653_v1 }
 0x3c2   :  { %1407 = vmatprep.subr.bf16.mxu0 %v1653_v1 }
 0x420   :  { %v432_v17 = vpop.f32.mrb[0].mxu0 }
 0x421   :  { %v1375_v18 = vpop.f32.mrb[1].mxu0 }
 0x422   :  { %v435_v19 = vpop.f32.mrb[2].mxu0 }
 0x423   :  { %v439_v20 = vpack.c.bf16 %v435_v19, %v432_v17  ;;  %v1376_v21 = vpop.f32.mrb[3].mxu0 }
 0x425   :  { %1398 = vmatmul.mubr.msk.bf16.vlgmr.msra.gmra.mrb[8].mxu0 %vm323_vm2, %v439_v20 }
 0x426   :  { %1409 = vmatprep.mubr.msk.bf16.mxu0 %vm1654_vm0, %v1653_v1 }
 0x493   :  { %v557_v22 = vpop.f32.mrb[4].mxu0 }
 0x494   :  { %v1387_v23 = vpop.f32.mrb[5].mxu0 }
 0x495   :  { %v560_v25 = vpop.f32.mrb[6].mxu0 }
 0x496   :  { %v564_v26 = vpack.c.bf16 %v560_v25, %v557_v22  ;;  %v1388_v27 = vpop.f32.mrb[7].mxu0 }
 0x498   :  { %1392 = vmatmul.mubr.msk.bf16.vlgmr.msra.gmra.mrb[20].mxu1 %vm323_vm2, %v564_v26 }
 0x499   :  { %1402 = vmatpush3.bf16.xpose.msra.mxu1 %v674_v28  ;;  %1403 = vmatprep.mubr.msk.bf16.mxu1 %vm1654_vm0, %v1653_v1 }
 0x49a   :  { %1413 = vmatprep.subr.bf16.mxu1 %v1653_v1 }
 0x4a0   :  { %1404 = vmatmul.mubr.msk.bf16.vlgmr.msra.gmra.mrb[24].mxu1 %vm323_vm2, %v667_v29 }
 0x4a1   :  { %1415 = vmatprep.mubr.msk.bf16.mxu1 %vm1654_vm0, %v1653_v1 }
 0x4f8   :  { %v659_v30 = vpop.f32.mrb[8].mxu0 }
 0x4f9   :  { %v1399_v31 = vpop.f32.mrb[9].mxu0 }
 0x4fa   :  { %v662_v32 = vpop.f32.mrb[10].mxu0 }
 0x4fb   :  { %v1400_v33 = vpop.f32.mrb[11].mxu0 }
 0x56b   :  { %v609_v34 = vpop.f32.mrb[20].mxu1 }
 0x56c   :  { %v1856_v35 = vadd.f32 %v659_v30, %v609_v34  ;;  %v1393_v36 = vpop.f32.mrb[21].mxu1 }
 0x56d   :  { %v612_v37 = vpop.f32.mrb[22].mxu1 }
 0x56e   :  { %v1858_v38 = vadd.f32 %v662_v32, %v612_v37  ;;  %v1394_v39 = vpop.f32.mrb[23].mxu1 }
 0x573   :  { %v710_v40 = vpop.f32.mrb[24].mxu1 }
 0x574   :  { %v711_v41 = vadd.f32 %v710_v40, %v1804_v14  ;;  %v1405_v42 = vpop.f32.mrb[25].mxu1 }
 0x575   :  { %v713_v43 = vpop.f32.mrb[26].mxu1 }
 0x576   :  { %v714_v44 = vadd.f32 %v713_v43, %v1806_v16  ;;  %v1406_v45 = vpop.f32.mrb[27].mxu1  ;;  %v717_v46 = vsel %vm371_vm3, %v711_v41, -inf }
 0x577   :  { %718 = vmax.xlane.f32.xlu1 %v717_v46 }
 0x578   :  { %v720_v47 = vsel %vm371_vm3, %v714_v44, -inf }
 0x579   :  { %721 = vmax.xlane.f32.xlu0 %v720_v47 }
 0x58f   :  { %740 = vrot.lane.b32.xlu0 %v1780_v49, %s1656_s26 }
 0x604   :  { %v719_v48 = vpop.xlane.xlu1 %718 }
 0x605   :  { %v723_v50 = vsub.f32 %v711_v41, %v719_v48 }
 0x606   :  { %v722_v51 = vpop.xlane.xlu0 %721 }
 0x607   :  { %v725_v52 = vmul.f32 1.442695, %v723_v50  ;;  %v724_v53 = vsub.f32 %v714_v44, %v722_v51 }
 0x609   :  { %1523 = vpow2.f32 %v725_v52  ;;  %v727_v54 = vmul.f32 1.442695, %v724_v53 }
 0x60a   :  { %v741_v55 = vpop.permute.xlu0 %740 }
 0x60b   :  { %1525 = vpow2.f32 %v727_v54  ;;  %1408 = vmatpush3.bf16.msra.mxu0 %v741_v55 }
 0x60c   :  { %1419 = vmatprep.subr.bf16.mxu0 %v1653_v1 }
 0x613   :  { %v1524_v56 = vpop.eup %1523 }
 0x614   :  { %v729_v57 = vsel %vm371_vm3, %v1524_v56, 0.0 }
 0x615   :  { %v1526_v58 = vpop.eup %1525  ;;  %730 = vadd.xlane.f32.xlu1 %v729_v57 }
 0x616   :  { %v732_v59 = vsel %vm371_vm3, %v1526_v58, 0.0 }
 0x619   :  { %733 = vadd.xlane.f32.xlu1 %v732_v59  ;;  %v77_v59 = vld [vmem:[#allocation5 + $0x52] ss:$0 sm:$0xff] }
 0x62a   :  { %842 = vrot.lane.b32.xlu1 %v1786_v9, %s1657_s27  ;;  %v1881_v9 = vld [vmem:[#allocation7 + $0x10] sm:$0xff] }
 0x62b   :  { %v1301_v12 = vcombine.high %v1881_v9, %v1881_v9 }
 0x62d   :  { %v795_v13 = vsel %vm571_vm4, %v1301_v12, 0 }
 0x62e   :  { %840 = vrot.lane.b32.xlu1 %v1784_v60, %s1657_s27  ;;  %1414 = vmatpush3.bf16.msra.mxu1 %v795_v13 }
 0x62f   :  { %1425 = vmatprep.subr.bf16.mxu1 %v1653_v1 }
 0x6a2   :  { %v731_v62 = vpop.xlane.xlu1 %730 }
 0x6a3   :  { %1527 = vrcp.f32 %v731_v62 }
 0x6a6   :  { %v734_v63 = vpop.xlane.xlu1 %733 }
 0x6a7   :  { %1529 = vrcp.f32 %v734_v63 }
 0x6aa   :  { %v843_v8 = vpop.permute.xlu1 %842 }
 0x6ab   :  { %v848_v11 = vsel %vm323_vm2, %v843_v8, 0 }
 0x6ad   :  { %v1528_v0 = vpop.eup %1527 }
 0x6ae   :  { %v737_v3 = vmul.f32 %v1528_v0, %v1524_v56  ;;  %v841_v60 = vpop.permute.xlu1 %840 }
 0x6b1   :  { %v1530_v2 = vpop.eup %1529 }
 0x6b2   :  { %v738_v5 = vmul.f32 %v1530_v2, %v1526_v58 }
 0x6b4   :  { %v739_v10 = vpack.c.bf16 %v738_v5, %v737_v3 }
 0x6b6   :  { %1410 = vmatmul.mubr.msk.bf16.vlgmr.msra.gmra.mrb[12].mxu0 %vm371_vm3, %v739_v10 }
 0x6b7   :  { %1420 = vmatpush3.bf16.xpose.msra.mxu0 %v848_v11  ;;  %1421 = vmatprep.mubr.msk.bf16.mxu0 %vm1654_vm0, %v1653_v1 }
 0x6b8   :  { %1431 = vmatprep.subr.bf16.mxu0 %v1653_v1 }
 0x6be   :  { %1422 = vmatmul.mubr.msk.bf16.vlgmr.msra.gmra.mrb[16].mxu0 %vm323_vm2, %v841_v60 }
 0x6bf   :  { %1433 = vmatprep.mubr.msk.bf16.mxu0 %vm1654_vm0, %v1653_v1 }
 0x789   :  { %v780_v15 = vpop.f32.mrb[12].mxu0 }
 0x78a   :  { %v1411_v17 = vpop.f32.mrb[13].mxu0 }
 0x78b   :  { %v783_v18 = vpop.f32.mrb[14].mxu0 }
 0x78c   :  { %v787_v19 = vpack.c.bf16 %v783_v18, %v780_v15  ;;  %v1412_v20 = vpop.f32.mrb[15].mxu0 }
 0x78e   :  { %1416 = vmatmul.mubr.msk.bf16.vlgmr.msra.gmra.mrb[28].mxu1 %vm323_vm2, %v787_v19 }
 0x78f   :  { %1427 = vmatprep.mubr.msk.bf16.mxu1 %vm1654_vm0, %v1653_v1 }
 0x791   :  { %v884_v21 = vpop.f32.mrb[16].mxu0 }
 0x792   :  { %v885_v22 = vadd.f32 %v884_v21, %v1804_v14  ;;  %v1423_v23 = vpop.f32.mrb[17].mxu0 }
 0x793   :  { %v887_v24 = vpop.f32.mrb[18].mxu0 }
 0x794   :  { %v888_v25 = vadd.f32 %v887_v24, %v1806_v16  ;;  %v1424_v26 = vpop.f32.mrb[19].mxu0  ;;  %v891_v27 = vsel %vm371_vm3, %v885_v22, -inf }
 0x795   :  { %892 = vmax.xlane.f32.xlu0 %v891_v27  ;;  %v1307_v26 = vcombine.low %v1836_v4, %v1829_v61  ;;  %v80_v4 = vld [vmem:[#allocation5 + $0x55] ss:$0 sm:$0xff] }
 0x796   :  { %v894_v28 = vsel %vm371_vm3, %v888_v25, -inf }
 0x797   :  { %895 = vmax.xlane.f32.xlu1 %v894_v28 }
 0x7a8   :  { %914 = vrot.lane.b32.xlu1 %v1780_v49, %s1657_s27  ;;  %v322_v49 = vld [vmem:[#allocation7 + $0x18] sm:$0xff] }
 0x7a9   :  { %v1305_v40 = vcombine.high %v322_v49, %v322_v49  ;;  %v1308_v27 = vcombine.low %v1881_v9, %v322_v49 }
 0x7ab   :  { %v969_v41 = vsel %vm571_vm4, %v1305_v40, 0 }
 0x7ac   :  { %1432 = vmatpush3.bf16.msra.mxu0 %v969_v41  ;;  %v1499_v41 = vld [vmem:[%s1978_s4] sm:$0xff]  }
 0x7ad   :  { %1445 = vmatprep.subr.bf16.mxu0 %v1653_v1 }
 0x822   :  { %v893_v29 = vpop.xlane.xlu0 %892 }
 0x823   :  { %v897_v30 = vsub.f32 %v885_v22, %v893_v29 }
 0x824   :  { %v896_v31 = vpop.xlane.xlu1 %895 }
 0x825   :  { %v899_v32 = vmul.f32 1.442695, %v897_v30  ;;  %v898_v33 = vsub.f32 %v888_v25, %v896_v31 }
 0x827   :  { %1531 = vpow2.f32 %v899_v32  ;;  %v901_v14 = vmul.f32 1.442695, %v898_v33 }
 0x828   :  { %v915_v34 = vpop.permute.xlu1 %914 }
 0x829   :  { %1533 = vpow2.f32 %v901_v14  ;;  %1426 = vmatpush3.bf16.msra.mxu1 %v915_v34 }
 0x82a   :  { %1437 = vmatprep.subr.bf16.mxu1 %v1653_v1 }
 0x831   :  { %v1532_v16 = vpop.eup %1531 }
 0x832   :  { %v903_v36 = vsel %vm371_vm3, %v1532_v16, 0.0 }
 0x833   :  { %v1534_v37 = vpop.eup %1533  ;;  %904 = vadd.xlane.f32.xlu0 %v903_v36 }
 0x834   :  { %v906_v39 = vsel %vm371_vm3, %v1534_v37, 0.0 }
 0x837   :  { %907 = vadd.xlane.f32.xlu0 %v906_v39 }
 0x861   :  { %v831_v42 = vpop.f32.mrb[28].mxu1 }
 0x862   :  { %v838_v43 = vadd.f32 %v831_v42, %v1856_v35  ;;  %v1417_v44 = vpop.f32.mrb[29].mxu1  ;;  %v1500_v42 = vld [vmem:[%s1978_s4 + $0x8] sm:$0xff]  }
 0x863   :  { %v834_v45 = vpop.f32.mrb[30].mxu1  ;;  %v1502_v44 = vld [vmem:[%s1978_s4 + $0x18] sm:$0xff]  }
 0x864   :  { %v839_v46 = vadd.f32 %v834_v45, %v1858_v38  ;;  %v1418_v47 = vpop.f32.mrb[31].mxu1  ;;  %v1503_v45 = vld [vmem:[%s1978_s4 + $0x20] sm:$0xff]  }
 0x865   :  { %v1505_v47 = vld [vmem:[%s1978_s4 + $0x30] sm:$0xff]  }
 0x8c0   :  { %v905_v48 = vpop.xlane.xlu0 %904 }
 0x8c1   :  { %1535 = vrcp.f32 %v905_v48  ;;  %v1506_v48 = vld [vmem:[%s1978_s4 + $0x38] sm:$0xff]  }
 0x8c4   :  { %v908_v50 = vpop.xlane.xlu0 %907 }
 0x8c5   :  { %1537 = vrcp.f32 %v908_v50  ;;  %v76_v50 = vld [vmem:[#allocation5 + $0x51] ss:$0 sm:$0xff] }
 0x8cb   :  { %v1536_v51 = vpop.eup %1535 }
 0x8cc   :  { %v911_v53 = vmul.f32 %v1536_v51, %v1532_v16  ;;  %v79_v16 = vld [vmem:[#allocation5 + $0x54] ss:$0 sm:$0xff] }
 0x8cf   :  { %v1538_v52 = vpop.eup %1537 }
 0x8d0   :  { %v912_v54 = vmul.f32 %v1538_v52, %v1534_v37 }
 0x8d2   :  { %v913_v55 = vpack.c.bf16 %v912_v54, %v911_v53 }
 0x8d4   :  { %1428 = vmatmul.mubr.msk.bf16.vlgmr.msra.gmra.mrb[32].mxu1 %vm371_vm3, %v913_v55 }
 0x8d5   :  { %1441 = vmatprep.mubr.msk.bf16.mxu1 %vm1654_vm0, %v1653_v1  ;;  %1438 = vmatpush3.bf16.msra.mxu1 %v1307_v26 }
 0x8d6   :  { %1439 = vmatprep.subr.bf16.mxu1 %v1653_v1 }
 0x8d9   :  { %1440 = vmatpush3.bf16.msra.mxu1 %v1308_v27 }
 0x9a7   :  { %v954_v35 = vpop.f32.mrb[32].mxu1 }
 0x9a8   :  { %v1429_v56 = vpop.f32.mrb[33].mxu1 }
 0x9a9   :  { %v957_v57 = vpop.f32.mrb[34].mxu1 }
 0x9aa   :  { %v961_v58 = vpack.c.bf16 %v957_v57, %v954_v35  ;;  %v1430_v38 = vpop.f32.mrb[35].mxu1 }
 0x9ac   :  { %1434 = vmatmul.mubr.msk.bf16.vlgmr.msra.gmra.mrb[20].mxu0 %vm323_vm2, %v961_v58 }
 0x9ad   :  { %1461 = vmatprep.mubr.msk.bf16.mxu0 %vm1654_vm0, %v1653_v1  ;;  %1446 = vmatpush3.bf16.msra.mxu0 %v1499_v41  ;;  %v82_v41 = vld [vmem:[#allocation5 + $0x57] ss:$0 sm:$0xff] }
 0x9ae   :  { %1447 = vmatprep.subr.bf16.mxu0 %v1653_v1 }
 0x9b1   :  { %1448 = vmatpush3.bf16.msra.mxu0 %v1500_v42 }
 0x9b2   :  { %1449 = vmatprep.subr.bf16.mxu0 %v1653_v1 }
 0xa7f   :  { %v1005_v62 = vpop.f32.mrb[20].mxu0 }
 0xa80   :  { %v1012_v63 = vadd.f32 %v1005_v62, %v838_v43  ;;  %v1435_v0 = vpop.f32.mrb[21].mxu0  ;;  %v1501_v43 = vld [vmem:[%s1978_s4 + $0x10] sm:$0xff]  }
 0xa81   :  { %v1008_v2 = vpop.f32.mrb[22].mxu0  ;;  %1450 = vmatpush3.bf16.msra.mxu0 %v1501_v43 }
 0xa82   :  { %v1014_v3 = vadd.f32 %v1012_v63, %v77_v59  ;;  %v1013_v5 = vadd.f32 %v1008_v2, %v839_v46  ;;  %v1436_v8 = vpop.f32.mrb[23].mxu0  ;;  %1451 = vmatprep.subr.bf16.mxu0 %v1653_v1  ;;  %v1504_v46 = vld [vmem:[%s1978_s4 + $0x28] sm:$0xff]   ;;  %s1658_s4 = smov [#allocation8]  }
 0xa83   :  { %s1265_s18 = sshll.u32 %s1658_s4, 4  ;;  %s1266_s18 = int_to_ptr.vmem [resolvable:$true] %s1265_s18 }
 0xa84   :  { %v1015_v10 = vadd.f32 %v1013_v5, %v77_v59  ;;  %v1016_v11 = vadd.f32 %v1014_v3, %v1746_v6  ;;  %s1617_s19 = scalar_lea.vmem %s1266_s18, 256  ;;  %p1622_p11 = scmp.lt.s32.totalorder %s1266_s18, %s1266_s18 }
 0xa85   :  { %1452 = vmatpush3.bf16.msra.mxu0 %v1502_v44  ;;  %p1618_p10 = scmp.ne.s32.totalorder %s1266_s18, %s1617_s19  ;;  %p1623_p12 = scmp.lt.s32.totalorder %s1617_s19, %s1617_s19 }
 0xa86   :  { %v1018_v60 = vsel %vm173_vm1, %v1016_v11, 0.0  ;;  %v1017_v12 = vadd.f32 %v1015_v10, %v1748_v7  ;;  %1453 = vmatprep.subr.bf16.mxu0 %v1653_v1 }
 0xa87   :  { %1019 = vadd.xlane.f32.xlu0 %v1018_v60  ;;  %p1624_p13 = por %p1623_p12, %p1622_p11 }
 0xa88   :  { %v1021_v13 = vsel %vm173_vm1, %v1017_v12, 0.0 }
 0xa89   :  { %1454 = vmatpush3.bf16.msra.mxu0 %v1503_v45  ;;  %p1625_p0 = pnand %p1624_p13, %p1618_p10 }
 0xa8a   :  { %1455 = vmatprep.subr.bf16.mxu0 %v1653_v1 }
 0xa8b   :  { %1022 = vadd.xlane.f32.xlu0 %v1021_v13 }
 0xa8d   :  { %1456 = vmatpush3.bf16.msra.mxu0 %v1504_v46 }
 0xa8e   :  { %1457 = vmatprep.subr.bf16.mxu0 %v1653_v1 }
 0xa91   :  { %1458 = vmatpush3.bf16.msra.mxu0 %v1505_v47 }
 0xa92   :  { %1459 = vmatprep.subr.bf16.mxu0 %v1653_v1 }
 0xa95   :  { %1460 = vmatpush3.bf16.msra.mxu0 %v1506_v48 }
 0xb14   :  { %v1020_v15 = vpop.xlane.xlu0 %1019 }
 0xb15   :  { %v1025_v17 = vmul.f32 0.03125, %v1020_v15 }
 0xb17   :  { %v1027_v18 = vsub.f32 %v1016_v11, %v1025_v17  ;;  %v78_v17 = vld [vmem:[#allocation5 + $0x53] ss:$0 sm:$0xff] }
 0xb18   :  { %v1023_v19 = vpop.xlane.xlu0 %1022 }
 0xb19   :  { %v1026_v20 = vmul.f32 0.03125, %v1023_v19  ;;  %v1029_v21 = vmul.f32 %v1027_v18, %v1027_v18 }
 0xb1b   :  { %v1028_v22 = vsub.f32 %v1017_v12, %v1026_v20  ;;  %v1031_v23 = vsel %vm173_vm1, %v1029_v21, 0.0 }
 0xb1c   :  { %1032 = vadd.xlane.f32.xlu0 %v1031_v23 }
 0xb1d   :  { %v1030_v24 = vmul.f32 %v1028_v22, %v1028_v22 }
 0xb1f   :  { %v1034_v25 = vsel %vm173_vm1, %v1030_v24, 0.0 }
 0xb20   :  { %1035 = vadd.xlane.f32.xlu0 %v1034_v25 }
 0xba9   :  { %v1033_v28 = vpop.xlane.xlu0 %1032 }
 0xbaa   :  { %v1037_v29 = vmul.f32 0.03125, %v1033_v28 }
 0xbac   :  { %v1039_v30 = vadd.f32 1e-05, %v1037_v29 }
 0xbad   :  { %v1036_v31 = vpop.xlane.xlu0 %1035 }
 0xbae   :  { %1539 = vrsqrt.f32 %v1039_v30  ;;  %v1038_v32 = vmul.f32 0.03125, %v1036_v31 }
 0xbb0   :  { %v1040_v33 = vadd.f32 1e-05, %v1038_v32 }
 0xbb2   :  { %1541 = vrsqrt.f32 %v1040_v33 }
 0xbb8   :  { %v1540_v14 = vpop.eup %1539 }
 0xbb9   :  { %v1043_v34 = vmul.f32 %v1540_v14, %v1027_v18 }
 0xbbb   :  { %v1045_v37 = vmul.f32 %v1043_v34, %v79_v16 }
 0xbbc   :  { %v1542_v36 = vpop.eup %1541 }
 0xbbd   :  { %v1044_v61 = vmul.f32 %v1542_v36, %v1028_v22  ;;  %v1047_v9 = vadd.f32 %v1045_v37, %v80_v4 }
 0xbbf   :  { %v1046_v39 = vmul.f32 %v1044_v61, %v79_v16 }
 0xbc1   :  { %v1048_v49 = vadd.f32 %v1046_v39, %v80_v4 }
 0xbc3   :  { %v1049_v40 = vpack.c.bf16 %v1048_v49, %v1047_v9  ;;  %v81_v49 = vld [vmem:[#allocation5 + $0x56] ss:$0 sm:$0xff] }
 0xbc5   :  { %1442 = vmatmul.mubr.msk.bf16.vlgmr.msra.gmra.mrb[36].mxu1 %vm173_vm1, %v1049_v40 }
 0xc98   :  { %v1095_v51 = vpop.f32.mrb[36].mxu1 }
 0xc99   :  { %v1096_v52 = vadd.f32 %v1095_v51, %v76_v50  ;;  %v1443_v53 = vpop.f32.mrb[37].mxu1 }
 0xc9a   :  { %v1098_v54 = vpop.f32.mrb[38].mxu1 }
 0xc9b   :  { %v1102_v55 = vmul.f32 %v1096_v52, %v1096_v52  ;;  %v1099_v35 = vadd.f32 %v1098_v54, %v76_v50  ;;  %v1444_v56 = vpop.f32.mrb[39].mxu1 }
 0xc9d   :  { %v1104_v57 = vmul.f32 %v1102_v55, %v1096_v52  ;;  %v1103_v58 = vmul.f32 %v1099_v35, %v1099_v35 }
 0xc9f   :  { %v1106_v38 = vmul.f32 0.044715, %v1104_v57  ;;  %v1105_v59 = vmul.f32 %v1103_v58, %v1099_v35 }
 0xca1   :  { %v1108_v62 = vadd.f32 %v1106_v38, %v1096_v52  ;;  %v1107_v63 = vmul.f32 0.044715, %v1105_v59 }
 0xca3   :  { %v1110_v1 = vmul.f32 0.7978846, %v1108_v62  ;;  %v1109_v0 = vadd.f32 %v1107_v63, %v1099_v35 }
 0xca5   :  { %1543 = vtanh.f32 %v1110_v1  ;;  %v1111_v2 = vmul.f32 0.7978846, %v1109_v0 }
 0xca7   :  { %1545 = vtanh.f32 %v1111_v2 }
 0xcaf   :  { %v1544_v3 = vpop.eup %1543 }
 0xcb0   :  { %v1114_v5 = vadd.f32 1.0, %v1544_v3 }
 0xcb1   :  { %v1546_v8 = vpop.eup %1545 }
 0xcb2   :  { %v1116_v10 = vmul.f32 0.5, %v1114_v5  ;;  %v1115_v11 = vadd.f32 1.0, %v1546_v8 }
 0xcb4   :  { %v1117_v60 = vmul.f32 0.5, %v1115_v11  ;;  %v1118_v12 = vmul.f32 %v1116_v10, %v1096_v52 }
 0xcb6   :  { %v1119_v13 = vmul.f32 %v1117_v60, %v1099_v35 }
 0xcb8   :  { %v1120_v15 = vpack.c.bf16 %v1119_v13, %v1118_v12 }
 0xcba   :  { %1462 = vmatmul.mubr.bf16.vlgmr.msra.gmra.mrb[24].mxu0 %v1120_v15 }
 0xd8d   :  { %v1219_v18 = vpop.f32.mrb[24].mxu0 }
 0xd8e   :  { %v1220_v19 = vadd.f32 %v1219_v18, %v78_v17  ;;  %v1463_v20 = vpop.f32.mrb[25].mxu0 }
 0xd8f   :  { %v1222_v21 = vpop.f32.mrb[26].mxu0 }
 0xd90   :  { %v1223_v22 = vadd.f32 %v1222_v21, %v78_v17  ;;  %v1464_v23 = vpop.f32.mrb[27].mxu0  ;;  %v1226_v24 = vadd.f32 %v1220_v19, %v1746_v6 }
 0xd92   :  { %v1228_v25 = vsel %vm173_vm1, %v1226_v24, 0.0  ;;  %v1227_v26 = vadd.f32 %v1223_v22, %v1748_v7 }
 0xd93   :  { %1229 = vadd.xlane.f32.xlu1 %v1228_v25 }
 0xd94   :  { %v1231_v27 = vsel %vm173_vm1, %v1227_v26, 0.0 }
 0xd95   :  { %1232 = vadd.xlane.f32.xlu0 %v1231_v27 }
 0xe20   :  { %v1230_v28 = vpop.xlane.xlu1 %1229 }
 0xe21   :  { %v1234_v29 = vmul.f32 0.03125, %v1230_v28 }
 0xe22   :  { %v1233_v30 = vpop.xlane.xlu0 %1232 }
 0xe23   :  { %v1236_v31 = vsub.f32 %v1226_v24, %v1234_v29  ;;  %v1235_v32 = vmul.f32 0.03125, %v1233_v30 }
 0xe25   :  { %v1237_v33 = vsub.f32 %v1227_v26, %v1235_v32  ;;  %v1238_v14 = vmul.f32 %v1236_v31, %v1236_v31 }
 0xe27   :  { %v1240_v34 = vsel %vm173_vm1, %v1238_v14, 0.0  ;;  %v1239_v16 = vmul.f32 %v1237_v33, %v1237_v33 }
 0xe28   :  { %1241 = vadd.xlane.f32.xlu0 %v1240_v34 }
 0xe29   :  { %v1243_v6 = vsel %vm173_vm1, %v1239_v16, 0.0 }
 0xe2c   :  { %1244 = vadd.xlane.f32.xlu0 %v1243_v6 }
 0xeb5   :  { %v1242_v36 = vpop.xlane.xlu0 %1241 }
 0xeb6   :  { %v1246_v7 = vmul.f32 0.03125, %v1242_v36 }
 0xeb8   :  { %v1248_v37 = vadd.f32 1e-05, %v1246_v7 }
 0xeb9   :  { %v1245_v61 = vpop.xlane.xlu0 %1244 }
 0xeba   :  { %1547 = vrsqrt.f32 %v1248_v37  ;;  %v1247_v4 = vmul.f32 0.03125, %v1245_v61 }
 0xebc   :  { %v1249_v39 = vadd.f32 1e-05, %v1247_v4 }
 0xebe   :  { %1549 = vrsqrt.f32 %v1249_v39 }
 0xec4   :  { %v1548_v9 = vpop.eup %1547 }
 0xec5   :  { %v1252_v40 = vmul.f32 %v1548_v9, %v1236_v31 }
 0xec7   :  { %v1254_v42 = vmul.f32 %v1252_v40, %v81_v49 }
 0xec8   :  { %v1550_v43 = vpop.eup %1549 }
 0xec9   :  { %v1253_v44 = vmul.f32 %v1550_v43, %v1237_v33  ;;  %v1256_v45 = vadd.f32 %v1254_v42, %v82_v41 }
 0xecb   :  { %v1255_v46 = vmul.f32 %v1253_v44, %v81_v49  ;;  %1258 = vst.msk [vmem:[#allocation8] sm:$0xff] %vm173_vm1, %v1256_v45 }
 0xecd   :  { %v1257_v47 = vadd.f32 %v1255_v46, %v82_v41 }
 0xecf   :  { %1259 = vst.msk [vmem:[#allocation8 + $0x8] sm:$0xff] %vm173_vm1, %v1257_v47 }
 0xed0   :  { %1628 = shalt.err (!%p1625_p0)
}
 0xed1   :  { %s1629_s22 = scalar_lea.hbm %s1979_s5, 256 }
 0xed2   :  { %p1630_p1 = scmp.ne.s32.totalorder %s1979_s5, %s1629_s22  ;;  %p1633_p2 = scmp.lt.u32.totalorder %s1629_s22, %s1979_s5 }
 0xed4   :  { %p1635_p3 = pnand %p1633_p2, %p1630_p1 }
 0xed6   :  { %1638 = shalt.err (!%p1635_p3)
}
 0xed7   :  { %1271 = dma.vmem_to_hbm [thread:$0]  %s1266_s18, 256, %s1979_s5, [#allocation4], %s1649_s1, %s1649_s1, %s1650_s17  }
 0xed8   :  { %1643 = dma.done.wait [#allocation4], 256  }
 0xed9   :  { %1644 = vsyncadd [#allocation4], 4294967040 }
 0xeda   :  { %1275 = vsyncpa [#allocation3], 1 }
 0xedb   :  { %1276 = vsyncpa [#allocation6], 1 }
 0xedc   :  { %1277 = vsyncpa [#allocation4], 1 }

</bundles_post_ra>
